<compile_context>
chip_gen: v7x
topology: tpu7x:2x2x1
jax: 0.10.0
libtpu: 0.0.40
codegen_flags: <defaults>
</compile_context>

<pallas_src>
import functools

import jax
import jax.numpy as jnp
from jax.experimental import pallas as pl
from jax.experimental.pallas import tpu as pltpu

LANE = 128
NEG = -1e30  # padded-logit bias -> exp() underflows to exactly 0


def _round_up(x, m):
    return (x + m - 1) // m * m


def _pick_batch_tile(batch):
    """Batch tile: multiple of 16 (bf16 sublane packing); single tile up to 256
    rows, otherwise >=2 tiles (v7x megacore) capped at 512 rows/tile."""
    b16 = _round_up(batch, 16)
    if b16 <= 256:
        return b16
    n_tiles = max(2, pl.cdiv(b16, 512))
    return _round_up(pl.cdiv(b16, n_tiles), 16)


def policy_kernel(belief_ref, latent_ref, w1a_ref, w1b_ref, w2_ref, w3_ref,
                  bias_ref, out_ref):
    hpad = w2_ref.shape[0]   # padded hidden width (multiple of 128)
    apad = w3_ref.shape[1]   # padded action width (multiple of 128)

    # Activations in bf16 for the MXU bf16 path; accumulate in f32.
    bel = belief_ref[...].astype(jnp.bfloat16)
    lat = latent_ref[...].astype(jnp.bfloat16)

    # fc1 (split to absorb the concat) + ReLU
    h1 = (jnp.dot(bel, w1a_ref[...], preferred_element_type=jnp.float32)
          + jnp.dot(lat, w1b_ref[...], preferred_element_type=jnp.float32)
          + bias_ref[0:1, :hpad])
    h1 = jnp.maximum(h1, 0.0)

    # fc2 + ReLU
    h2 = (jnp.dot(h1.astype(jnp.bfloat16), w2_ref[...],
                  preferred_element_type=jnp.float32)
          + bias_ref[1:2, :hpad])
    h2 = jnp.maximum(h2, 0.0)

    # action head + softmax (padded lanes carry bias -1e30 -> prob exactly 0)
    logits = (jnp.dot(h2.astype(jnp.bfloat16), w3_ref[...],
                      preferred_element_type=jnp.float32)
              + bias_ref[2:3, :apad])
    m = jnp.max(logits, axis=-1, keepdims=True)
    e = jnp.exp(logits - m)
    denom = jnp.sum(e, axis=-1, keepdims=True)
    # Exact normalization (not approx reciprocal): rows sum to 1 to f32 ulps,
    # which downstream Categorical sampling / log_prob relies on.
    out_ref[...] = (e / denom).astype(out_ref.dtype)


def policy_forward(belief, latent, kparams, action_dim):
    """belief: (B, belief_dim) or (belief_dim,); latent likewise.
    Returns softmax action probabilities of shape (B, action_dim)."""
    if belief.ndim == 1:
        belief = belief[None, :]
    if latent.ndim == 1:
        latent = latent[None, :]

    w1a, w1b, w2, w3, bias = (kparams["w1a"], kparams["w1b"], kparams["w2"],
                              kparams["w3"], kparams["bias"])
    belief_dim = w1a.shape[0]
    latent_dim = w1b.shape[0]
    hpad = w2.shape[0]
    apad = w3.shape[1]
    padw = bias.shape[1]

    B = belief.shape[0]
    TB = _pick_batch_tile(B)
    Bp = _round_up(B, TB)
    if Bp != B:
        # Remainder tile only for batches not divisible by TB (costs an extra
        # HBM round trip of the inputs; power-of-two RL batches skip this).
        pad = ((0, Bp - B), (0, 0))
        belief = jnp.pad(belief, pad)
        latent = jnp.pad(latent, pad)

    out = pl.pallas_call(
        policy_kernel,
        out_shape=jax.ShapeDtypeStruct((Bp, apad), jnp.float32),
        grid=(Bp // TB,),
        in_specs=[
            pl.BlockSpec((TB, belief_dim), lambda i: (i, 0)),
            pl.BlockSpec((TB, latent_dim), lambda i: (i, 0)),
            # Weights/biases: constant block index -> fetched once, VMEM-resident.
            pl.BlockSpec((belief_dim, hpad), lambda i: (0, 0)),
            pl.BlockSpec((latent_dim, hpad), lambda i: (0, 0)),
            pl.BlockSpec((hpad, hpad), lambda i: (0, 0)),
            pl.BlockSpec((hpad, apad), lambda i: (0, 0)),
            pl.BlockSpec((3, padw), lambda i: (0, 0)),
        ],
        out_specs=pl.BlockSpec((TB, apad), lambda i: (i, 0)),
        compiler_params=pltpu.CompilerParams(
            dimension_semantics=("parallel",)),
    )(belief, latent, w1a, w1b, w2, w3, bias)

    return out[:B, :action_dim]


def init_logical_params(key, belief_dim, latent_dim, hidden_dim, action_dim):
    """PyTorch-Linear-like uniform init; weights stored as (in, out) f32."""
    in1 = belief_dim + latent_dim
    ks = jax.random.split(key, 6)

    def lin(kw, kb, fan_in, fan_out):
        bound = 1.0 / float(fan_in) ** 0.5
        w = jax.random.uniform(kw, (fan_in, fan_out), jnp.float32, -bound, bound)
        b = jax.random.uniform(kb, (fan_out,), jnp.float32, -bound, bound)
        return w, b

    w1, b1 = lin(ks[0], ks[1], in1, hidden_dim)
    w2, b2 = lin(ks[2], ks[3], hidden_dim, hidden_dim)
    w3, b3 = lin(ks[4], ks[5], hidden_dim, action_dim)
    return dict(w1=w1, b1=b1, w2=w2, b2=b2, w3=w3, b3=b3)


def pack_params(p, belief_dim, latent_dim, hidden_dim, action_dim):
    """Split W1, zero-pad hidden/action dims to 128 lanes, cast weights to bf16,
    pack biases into one (3, padw) f32 array (b3 padded lanes = -1e30)."""
    hpad = _round_up(hidden_dim, LANE)
    apad = _round_up(action_dim, LANE)
    padw = max(hpad, apad)

    def pad2(w, rows, cols):
        return jnp.pad(w, ((0, rows - w.shape[0]), (0, cols - w.shape[1])))

    w1a = pad2(p["w1"][:belief_dim], belief_dim, hpad).astype(jnp.bfloat16)
    w1b = pad2(p["w1"][belief_dim:], latent_dim, hpad).astype(jnp.bfloat16)
    w2 = pad2(p["w2"], hpad, hpad).astype(jnp.bfloat16)
    w3 = pad2(p["w3"], hpad, apad).astype(jnp.bfloat16)

    b1 = jnp.pad(p["b1"], (0, padw - hidden_dim))
    b2 = jnp.pad(p["b2"], (0, padw - hidden_dim))
    b3 = jnp.pad(p["b3"], (0, padw - action_dim), constant_values=NEG)
    bias = jnp.stack([b1, b2, b3]).astype(jnp.float32)  # (3, padw)

    return dict(w1a=w1a, w1b=w1b, w2=w2, w3=w3, bias=bias)


def reference_forward_bf16(belief, latent, p):
    """Plain-JAX reference matching the kernel's precision choices."""
    if belief.ndim == 1:
        belief = belief[None, :]
    if latent.ndim == 1:
        latent = latent[None, :]
    x = jnp.concatenate([belief, latent], axis=-1)

    def layer(x, w, b):
        return jnp.dot(x.astype(jnp.bfloat16), w.astype(jnp.bfloat16),
                       preferred_element_type=jnp.float32) + b

    h1 = jax.nn.relu(layer(x, p["w1"], p["b1"]))
    h2 = jax.nn.relu(layer(h1, p["w2"], p["b2"]))
    return jax.nn.softmax(layer(h2, p["w3"], p["b3"]), axis=-1)


def reference_forward_f32(belief, latent, p):
    """Full-f32 reference (exact PyTorch semantics)."""
    if belief.ndim == 1:
        belief = belief[None, :]
    if latent.ndim == 1:
        latent = latent[None, :]
    x = jnp.concatenate([belief, latent], axis=-1)
    h1 = jax.nn.relu(x @ p["w1"] + p["b1"])
    h2 = jax.nn.relu(h1 @ p["w2"] + p["b2"])
    return jax.nn.softmax(h2 @ p["w3"] + p["b3"], axis=-1)


if __name__ == "__main__":
    # Small shapes consistent with the module's forward; batch=16 fills a full
    # bf16 vreg (16 sublanes) on the MXU LHS feed.
    batch = 16
    belief_dim = 16
    latent_dim = 16
    hidden_dim = 32
    action_dim = 4

    key = jax.random.PRNGKey(0)
    kp, kb, kl = jax.random.split(key, 3)
    p_f32 = init_logical_params(kp, belief_dim, latent_dim, hidden_dim, action_dim)
    kparams = pack_params(p_f32, belief_dim, latent_dim, hidden_dim, action_dim)

    belief = jax.random.normal(kb, (batch, belief_dim), jnp.float32)
    latent = jax.random.normal(kl, (batch, latent_dim), jnp.float32)

    # jit the wrapper so pad/pallas/slice fuse into one dispatch (for an RL
    # rollout loop, jit the whole rollout / keep the step loop inside one call).
    fwd = jax.jit(functools.partial(policy_forward, action_dim=action_dim))
    out = fwd(belief, latent, kparams)
    out = jax.block_until_ready(out)

    ref_bf16 = reference_forward_bf16(belief, latent, p_f32)
    ref_f32 = reference_forward_f32(belief, latent, p_f32)

    assert out.shape == (batch, action_dim)
    assert jnp.allclose(out, ref_bf16, atol=2e-3, rtol=2e-3), "mismatch vs bf16 reference"
    assert jnp.allclose(out, ref_f32, atol=5e-2, rtol=5e-2), "mismatch vs f32 reference"
    assert jnp.allclose(jnp.sum(out, axis=-1), 1.0, atol=2e-3), "softmax rows must sum to 1"

    print("KERNEL_OK")
</pallas_src>

<mosaic_0001>
module attributes {stable_mosaic.version = 11 : i64} {
  func.func @policy_kernel(%arg0: i32, %arg1: memref<16x16xf32, #tpu.memory_space<vmem>>, %arg2: memref<16x16xf32, #tpu.memory_space<vmem>>, %arg3: memref<16x128xbf16, #tpu.memory_space<vmem>>, %arg4: memref<16x128xbf16, #tpu.memory_space<vmem>>, %arg5: memref<128x128xbf16, #tpu.memory_space<vmem>>, %arg6: memref<128x128xbf16, #tpu.memory_space<vmem>>, %arg7: memref<3x128xf32, #tpu.memory_space<vmem>>, %arg8: memref<16x128xf32, #tpu.memory_space<vmem>>) attributes {dimension_semantics = [#tpu.dimension_semantics<parallel>], iteration_bounds = array<i64: 1>, scalar_prefetch = 0 : i64, scratch_operands = 0 : i64, tpu.core_type = #tpu.core_type<tc>, window_params = [{transform_indices = @transform_0, window_bounds = array<i64: 16, 16>}, {transform_indices = @transform_1, window_bounds = array<i64: 16, 16>}, {pipeline_mode = #tpu.pipeline_mode<synchronous>, transform_indices = @transform_2, window_bounds = array<i64: 16, 128>}, {pipeline_mode = #tpu.pipeline_mode<synchronous>, transform_indices = @transform_3, window_bounds = array<i64: 16, 128>}, {pipeline_mode = #tpu.pipeline_mode<synchronous>, transform_indices = @transform_4, window_bounds = array<i64: 128, 128>}, {pipeline_mode = #tpu.pipeline_mode<synchronous>, transform_indices = @transform_5, window_bounds = array<i64: 128, 128>}, {pipeline_mode = #tpu.pipeline_mode<synchronous>, transform_indices = @transform_6, window_bounds = array<i64: 3, 128>}, {transform_indices = @transform_7, window_bounds = array<i64: 16, 128>}]} {
    %c0 = arith.constant 0 : index
    %c0_0 = arith.constant 0 : index
    %0 = vector.load %arg1[%c0, %c0_0] : memref<16x16xf32, #tpu.memory_space<vmem>>, vector<16x16xf32>
    %1 = arith.truncf %0 : vector<16x16xf32> to vector<16x16xbf16>
    %c0_1 = arith.constant 0 : index
    %c0_2 = arith.constant 0 : index
    %2 = vector.load %arg2[%c0_1, %c0_2] : memref<16x16xf32, #tpu.memory_space<vmem>>, vector<16x16xf32>
    %3 = arith.truncf %2 : vector<16x16xf32> to vector<16x16xbf16>
    %c0_3 = arith.constant 0 : index
    %c0_4 = arith.constant 0 : index
    %4 = vector.load %arg3[%c0_3, %c0_4] : memref<16x128xbf16, #tpu.memory_space<vmem>>, vector<16x128xbf16>
    %cst = arith.constant dense<0.000000e+00> : vector<16x128xf32>
    %5 = tpu.matmul %1, %4, %cst {dimension_numbers = #tpu.dot_dimension_numbers<[1], [0], [0], [1], [0, 0, 1, 1], [], []>} : vector<16x16xbf16>, vector<16x128xbf16>, vector<16x128xf32> -> vector<16x128xf32>
    %c0_5 = arith.constant 0 : index
    %c0_6 = arith.constant 0 : index
    %6 = vector.load %arg4[%c0_5, %c0_6] : memref<16x128xbf16, #tpu.memory_space<vmem>>, vector<16x128xbf16>
    %cst_7 = arith.constant dense<0.000000e+00> : vector<16x128xf32>
    %7 = tpu.matmul %3, %6, %cst_7 {dimension_numbers = #tpu.dot_dimension_numbers<[1], [0], [0], [1], [0, 0, 1, 1], [], []>} : vector<16x16xbf16>, vector<16x128xbf16>, vector<16x128xf32> -> vector<16x128xf32>
    %8 = arith.addf %5, %7 : vector<16x128xf32>
    %c0_8 = arith.constant 0 : index
    %c0_9 = arith.constant 0 : index
    %9 = vector.load %arg7[%c0_8, %c0_9] : memref<3x128xf32, #tpu.memory_space<vmem>>, vector<1x128xf32>
    %10 = vector.broadcast %9 : vector<1x128xf32> to vector<16x128xf32>
    %11 = arith.addf %8, %10 : vector<16x128xf32>
    %cst_10 = arith.constant 0.000000e+00 : f32
    %12 = vector.broadcast %cst_10 : f32 to vector<16x128xf32>
    %13 = arith.maximumf %11, %12 : vector<16x128xf32>
    %14 = arith.truncf %13 : vector<16x128xf32> to vector<16x128xbf16>
    %c0_11 = arith.constant 0 : index
    %c0_12 = arith.constant 0 : index
    %15 = vector.load %arg5[%c0_11, %c0_12] : memref<128x128xbf16, #tpu.memory_space<vmem>>, vector<128x128xbf16>
    %cst_13 = arith.constant dense<0.000000e+00> : vector<16x128xf32>
    %16 = tpu.matmul %14, %15, %cst_13 {dimension_numbers = #tpu.dot_dimension_numbers<[1], [0], [0], [1], [0, 0, 1, 1], [], []>} : vector<16x128xbf16>, vector<128x128xbf16>, vector<16x128xf32> -> vector<16x128xf32>
    %c1 = arith.constant 1 : index
    %c0_14 = arith.constant 0 : index
    %17 = vector.load %arg7[%c1, %c0_14] : memref<3x128xf32, #tpu.memory_space<vmem>>, vector<1x128xf32>
    %18 = vector.broadcast %17 : vector<1x128xf32> to vector<16x128xf32>
    %19 = arith.addf %16, %18 : vector<16x128xf32>
    %cst_15 = arith.constant 0.000000e+00 : f32
    %20 = vector.broadcast %cst_15 : f32 to vector<16x128xf32>
    %21 = arith.maximumf %19, %20 : vector<16x128xf32>
    %22 = arith.truncf %21 : vector<16x128xf32> to vector<16x128xbf16>
    %c0_16 = arith.constant 0 : index
    %c0_17 = arith.constant 0 : index
    %23 = vector.load %arg6[%c0_16, %c0_17] : memref<128x128xbf16, #tpu.memory_space<vmem>>, vector<128x128xbf16>
    %cst_18 = arith.constant dense<0.000000e+00> : vector<16x128xf32>
    %24 = tpu.matmul %22, %23, %cst_18 {dimension_numbers = #tpu.dot_dimension_numbers<[1], [0], [0], [1], [0, 0, 1, 1], [], []>} : vector<16x128xbf16>, vector<128x128xbf16>, vector<16x128xf32> -> vector<16x128xf32>
    %c2 = arith.constant 2 : index
    %c0_19 = arith.constant 0 : index
    %25 = vector.load %arg7[%c2, %c0_19] : memref<3x128xf32, #tpu.memory_space<vmem>>, vector<1x128xf32>
    %26 = vector.broadcast %25 : vector<1x128xf32> to vector<16x128xf32>
    %27 = arith.addf %24, %26 : vector<16x128xf32>
    %cst_20 = arith.constant dense<0xFF800000> : vector<16xf32>
    %28 = vector.multi_reduction <maximumf>, %27, %cst_20 [1] : vector<16x128xf32> to vector<16xf32>
    %29 = vector.shape_cast %28 : vector<16xf32> to vector<16x1xf32>
    %30 = vector.broadcast %29 : vector<16x1xf32> to vector<16x128xf32>
    %31 = arith.subf %27, %30 : vector<16x128xf32>
    %32 = math.exp %31 : vector<16x128xf32>
    %cst_21 = arith.constant dense<0.000000e+00> : vector<16xf32>
    %33 = vector.multi_reduction <add>, %32, %cst_21 [1] : vector<16x128xf32> to vector<16xf32>
    %34 = vector.shape_cast %33 : vector<16xf32> to vector<16x1xf32>
    %35 = vector.broadcast %34 : vector<16x1xf32> to vector<16x128xf32>
    %36 = arith.divf %32, %35 : vector<16x128xf32>
    %c0_22 = arith.constant 0 : index
    %c0_23 = arith.constant 0 : index
    %37 = vector.load %arg8[%c0_22, %c0_23] : memref<16x128xf32, #tpu.memory_space<vmem>>, vector<16x128xf32>
    tpu.vector_store %arg8[%c0_22, %c0_23], %36 {strides = array<i32>} : memref<16x128xf32, #tpu.memory_space<vmem>>, vector<16x128xf32>,
    return
  }
  func.func @transform_0(%arg0: i32) -> (i32, i32) {
    %c0_i32 = arith.constant 0 : i32
    %c0_i32_0 = arith.constant 0 : i32
    return %arg0, %c0_i32 : i32, i32
  }
  func.func @transform_1(%arg0: i32) -> (i32, i32) {
    %c0_i32 = arith.constant 0 : i32
    %c0_i32_0 = arith.constant 0 : i32
    return %arg0, %c0_i32 : i32, i32
  }
  func.func @transform_2(%arg0: i32) -> (i32, i32) {
    %c0_i32 = arith.constant 0 : i32
    %c0_i32_0 = arith.constant 0 : i32
    %c0_i32_1 = arith.constant 0 : i32
    return %c0_i32, %c0_i32_0 : i32, i32
  }
  func.func @transform_3(%arg0: i32) -> (i32, i32) {
    %c0_i32 = arith.constant 0 : i32
    %c0_i32_0 = arith.constant 0 : i32
    %c0_i32_1 = arith.constant 0 : i32
    return %c0_i32, %c0_i32_0 : i32, i32
  }
  func.func @transform_4(%arg0: i32) -> (i32, i32) {
    %c0_i32 = arith.constant 0 : i32
    %c0_i32_0 = arith.constant 0 : i32
    %c0_i32_1 = arith.constant 0 : i32
    return %c0_i32, %c0_i32_0 : i32, i32
  }
  func.func @transform_5(%arg0: i32) -> (i32, i32) {
    %c0_i32 = arith.constant 0 : i32
    %c0_i32_0 = arith.constant 0 : i32
    %c0_i32_1 = arith.constant 0 : i32
    return %c0_i32, %c0_i32_0 : i32, i32
  }
  func.func @transform_6(%arg0: i32) -> (i32, i32) {
    %c0_i32 = arith.constant 0 : i32
    %c0_i32_0 = arith.constant 0 : i32
    %c0_i32_1 = arith.constant 0 : i32
    return %c0_i32, %c0_i32_0 : i32, i32
  }
  func.func @transform_7(%arg0: i32) -> (i32, i32) {
    %c0_i32 = arith.constant 0 : i32
    %c0_i32_0 = arith.constant 0 : i32
    return %arg0, %c0_i32 : i32, i32
  }
}

</mosaic_0001>

<bundles_post_ra>
// kernel: policy_forward.1
= control target key start
LH: loop header
LB: loop body
LE: loop exit
PB: predicated region body
PF: predicated region fallthrough
CT: control target
= control target key end

     0   :  { %12 = vsyncpa [#allocation3], 0  ;;  %s928_s0 = inlined_call_operand.hbm [shape: f32[16,16], index: 0, kind: input, shape index: {}]   ;;  %s929_s1 = inlined_call_operand.hbm [shape: f32[16,16], index: 1, kind: input, shape index: {}]   ;;  %s930_s2 = inlined_call_operand.vmem [shape: bf16[16,128], index: 2, kind: input, shape index: {}]   ;;  %s931_s3 = inlined_call_operand.hbm [shape: bf16[16,128], index: 3, kind: input, shape index: {}]   ;;  %s932_s4 = inlined_call_operand.hbm [shape: bf16[128,128], index: 4, kind: input, shape index: {}]   ;;  %s933_s5 = inlined_call_operand.hbm [shape: bf16[128,128], index: 5, kind: input, shape index: {}]   ;;  %s934_s6 = inlined_call_operand.hbm [shape: f32[3,128], index: 6, kind: input, shape index: {}]   ;;  %s935_s7 = inlined_call_operand.vmem [shape: f32[16,128], index: 7, kind: output, shape index: {}]  }
   0x1   :  { %13 = vsyncpa [#allocation5], 0 }
   0x2   :  { %14 = vsyncpa [#allocation8], 0 }
   0x3   :  { %15 = vsyncpa [#allocation11], 0  ;;  %s754_s24 = smov [#allocation4]   ;;  %s614_s28 = scalar_lea.hbm %s929_s1, 256 }
   0x4   :  { %s33_s25 = sshll.u32 %s754_s24, 4  ;;  %p615_p0 = scmp.ne.s32.totalorder %s929_s1, %s614_s28  ;;  %s34_s25 = int_to_ptr.vmem [resolvable:$true] %s33_s25 }
   0x5   :  { %p618_p1 = scmp.lt.u32.totalorder %s614_s28, %s929_s1 }
   0x7   :  { %p620_p2 = pnand %p618_p1, %p615_p0 }
   0x9   :  { %623 = shalt.err (!%p620_p2)
}
   0xa   :  { %s624_s10 = scalar_lea.vmem %s34_s25, 256  ;;  %p629_p4 = scmp.lt.s32.totalorder %s34_s25, %s34_s25 }
   0xb   :  { %p625_p3 = scmp.ne.s32.totalorder %s34_s25, %s624_s10  ;;  %p630_p5 = scmp.lt.s32.totalorder %s624_s10, %s624_s10 }
   0xd   :  { %p631_p6 = por %p630_p5, %p629_p4 }
   0xf   :  { %p632_p7 = pnand %p631_p6, %p625_p3 }
  0x11   :  { %635 = shalt.err (!%p632_p7)
}
  0x12   :  { %s755_s11 = smov 128   ;;  %s756_s12 = smov 8  }
  0x13   :  { %39 = dma.hbm_to_vmem [thread:$0]  %s929_s1, 256, %s34_s25, [#allocation5], %s755_s11, %s755_s11, %s756_s12  }
  0x14   :  { %s757_s15 = smov [#allocation7]   ;;  %s758_s17 = smov [#allocation2]  }
  0x15   :  { %s59_s16 = sshll.u32 %s757_s15, 4  ;;  %s21_s18 = sshll.u32 %s758_s17, 4  ;;  %s60_s16 = int_to_ptr.vmem [resolvable:$true] %s59_s16  ;;  %s22_s18 = int_to_ptr.vmem [resolvable:$true] %s21_s18 }
  0x16   :  { %s636_s21 = scalar_lea.hbm %s932_s4, 1024 }
  0x17   :  { %p637_p8 = scmp.ne.s32.totalorder %s932_s4, %s636_s21  ;;  %p640_p9 = scmp.lt.u32.totalorder %s636_s21, %s932_s4 }
  0x19   :  { %p642_p10 = pnand %p640_p9, %p637_p8 }
  0x1b   :  { %645 = shalt.err (!%p642_p10)
}
  0x1c   :  { %s646_s1 = scalar_lea.vmem %s60_s16, 1024  ;;  %p651_p12 = scmp.lt.s32.totalorder %s60_s16, %s60_s16 }
  0x1d   :  { %p647_p11 = scmp.ne.s32.totalorder %s60_s16, %s646_s1  ;;  %p652_p13 = scmp.lt.s32.totalorder %s646_s1, %s646_s1 }
  0x1f   :  { %p653_p0 = por %p652_p13, %p651_p12 }
  0x21   :  { %p654_p1 = pnand %p653_p0, %p647_p11 }
  0x23   :  { %657 = shalt.err (!%p654_p1)
}
  0x24   :  { %s759_s25 = smov 64   ;;  %s760_s27 = smov 4  }
  0x25   :  { %65 = dma.hbm_to_vmem [thread:$0]  %s932_s4, 1024, %s60_s16, [#allocation8], %s759_s25, %s759_s25, %s760_s27  }
  0x26   :  { %s658_s9 = scalar_lea.hbm %s928_s0, 256 }
  0x27   :  { %p659_p2 = scmp.ne.s32.totalorder %s928_s0, %s658_s9  ;;  %p662_p3 = scmp.lt.u32.totalorder %s658_s9, %s928_s0 }
  0x29   :  { %p664_p4 = pnand %p662_p3, %p659_p2 }
  0x2b   :  { %667 = shalt.err (!%p664_p4)
}
  0x2c   :  { %s668_s17 = scalar_lea.vmem %s22_s18, 256  ;;  %p673_p6 = scmp.lt.s32.totalorder %s22_s18, %s22_s18 }
  0x2d   :  { %p669_p5 = scmp.ne.s32.totalorder %s22_s18, %s668_s17  ;;  %p674_p7 = scmp.lt.s32.totalorder %s668_s17, %s668_s17 }
  0x2f   :  { %p675_p8 = por %p674_p7, %p673_p6 }
  0x31   :  { %p676_p9 = pnand %p675_p8, %p669_p5 }
  0x33   :  { %679 = shalt.err (!%p676_p9)
}
  0x34   :  { %27 = dma.hbm_to_vmem [thread:$0]  %s928_s0, 256, %s22_s18, [#allocation3], %s755_s11, %s755_s11, %s756_s12  }
  0x35   :  { %s761_s19 = smov [#allocation6]   ;;  %s762_s21 = smov [#allocation9]  }
  0x36   :  { %s47_s20 = sshll.u32 %s761_s19, 4  ;;  %s71_s22 = sshll.u32 %s762_s21, 4  ;;  %s48_s20 = int_to_ptr.vmem [resolvable:$true] %s47_s20  ;;  %s72_s22 = int_to_ptr.vmem [resolvable:$true] %s71_s22 }
  0x37   :  { %s680_s26 = scalar_lea.hbm %s931_s3, 128 }
  0x38   :  { %p681_p10 = scmp.ne.s32.totalorder %s931_s3, %s680_s26  ;;  %p684_p11 = scmp.lt.u32.totalorder %s680_s26, %s931_s3 }
  0x3a   :  { %p686_p12 = pnand %p684_p11, %p681_p10 }
  0x3c   :  { %689 = shalt.err (!%p686_p12)
}
  0x3d   :  { %s690_s0 = scalar_lea.vmem %s48_s20, 128  ;;  %p695_p0 = scmp.lt.s32.totalorder %s48_s20, %s48_s20 }
  0x3e   :  { %p691_p13 = scmp.ne.s32.totalorder %s48_s20, %s690_s0  ;;  %p696_p1 = scmp.lt.s32.totalorder %s690_s0, %s690_s0 }
  0x40   :  { %p697_p2 = por %p696_p1, %p695_p0 }
  0x42   :  { %p698_p3 = pnand %p697_p2, %p691_p13 }
  0x44   :  { %701 = shalt.err (!%p698_p3)
}
  0x45   :  { %53 = dma.hbm_to_vmem [thread:$0]  %s931_s3, 128, %s48_s20, [#allocation5], %s759_s25, %s759_s25, %s760_s27  }
  0x46   :  { %s702_s9 = scalar_lea.hbm %s933_s5, 1024 }
  0x47   :  { %p703_p4 = scmp.ne.s32.totalorder %s933_s5, %s702_s9  ;;  %p706_p5 = scmp.lt.u32.totalorder %s702_s9, %s933_s5 }
  0x49   :  { %p708_p6 = pnand %p706_p5, %p703_p4 }
  0x4b   :  { %711 = shalt.err (!%p708_p6)
}
  0x4c   :  { %s712_s17 = scalar_lea.vmem %s72_s22, 1024  ;;  %p717_p8 = scmp.lt.s32.totalorder %s72_s22, %s72_s22 }
  0x4d   :  { %p713_p7 = scmp.ne.s32.totalorder %s72_s22, %s712_s17  ;;  %p718_p9 = scmp.lt.s32.totalorder %s712_s17, %s712_s17 }
  0x4f   :  { %p719_p10 = por %p718_p9, %p717_p8 }
  0x51   :  { %p720_p11 = pnand %p719_p10, %p713_p7 }
  0x53   :  { %723 = shalt.err (!%p720_p11)
}
  0x54   :  { %77 = dma.hbm_to_vmem [thread:$0]  %s933_s5, 1024, %s72_s22, [#allocation8], %s759_s25, %s759_s25, %s760_s27  }
  0x55   :  { %s763_s16 = smov [#allocation10]   ;;  %s724_s23 = scalar_lea.hbm %s934_s6, 64 }
  0x56   :  { %s84_s19 = sshll.u32 %s763_s16, 4  ;;  %p725_p12 = scmp.ne.s32.totalorder %s934_s6, %s724_s23  ;;  %s85_s19 = int_to_ptr.vmem [resolvable:$true] %s84_s19 }
  0x57   :  { %p728_p13 = scmp.lt.u32.totalorder %s724_s23, %s934_s6 }
  0x59   :  { %p730_p0 = pnand %p728_p13, %p725_p12 }
  0x5b   :  { %733 = shalt.err (!%p730_p0)
}
  0x5c   :  { %s734_s29 = scalar_lea.vmem %s85_s19, 64  ;;  %p739_p2 = scmp.lt.s32.totalorder %s85_s19, %s85_s19 }
  0x5d   :  { %p735_p1 = scmp.ne.s32.totalorder %s85_s19, %s734_s29  ;;  %p740_p3 = scmp.lt.s32.totalorder %s734_s29, %s734_s29 }
  0x5f   :  { %p741_p4 = por %p740_p3, %p739_p2 }
  0x61   :  { %p742_p5 = pnand %p741_p4, %p735_p1 }
  0x63   :  { %745 = shalt.err (!%p742_p5)
}
  0x64   :  { %87 = dma.hbm_to_vmem [thread:$0]  %s934_s6, 64, %s85_s19, [#allocation11]  }
  0x65   :  { %746 = dma.done.wait [#allocation3], 256  }
  0x66   :  { %747 = vsyncadd [#allocation3], 4294967040 }
  0x67   :  { %748 = dma.done.wait [#allocation5], 384  }
  0x68   :  { %749 = vsyncadd [#allocation5], 4294966912 }
  0x69   :  { %750 = dma.done.wait [#allocation8], 2048  }
  0x6a   :  { %751 = vsyncadd [#allocation8], 4294965248 }
  0x6b   :  { %752 = dma.done.wait [#allocation11], 64  }
  0x6c   :  { %753 = vsyncadd [#allocation11], 4294967232  ;;  %v764_v0 = vmov 0.0   ;;  %vm765_vm0 = vmmov 0   ;;  %v588_v1 = vld [vmem:[#allocation6] sm:$0xff]   ;;  %v110_v3 = vld [vmem:[#allocation4] sm:$0xff] }
  0x6d   :  { %524 = vmatprep.subr.bf16.mxu0 %v764_v0  ;;  %530 = vmatprep.subr.bf16.mxu1 %v764_v0  ;;  %v589_v2 = vld [vmem:[%s930_s2] sm:$0xff]   ;;  %v111_v4 = vld [vmem:[#allocation4 + $0x8] sm:$0xff]  ;;  %vm123_vm1 = vcmask 130048   ;;  %v108_v7 = vld [vmem:[#allocation2 + $0x8] sm:$0xff] }
  0x6e   :  { %526 = vmatprep.mubr.msk.bf16.mxu0 %vm765_vm0, %v764_v0  ;;  %532 = vmatprep.mubr.msk.bf16.mxu1 %vm765_vm0, %v764_v0  ;;  %v107_v5 = vld [vmem:[#allocation2] sm:$0xff]  ;;  %v112_v6 = vpack.c.bf16 %v111_v4, %v110_v3  ;;  %v590_v9 = vld [vmem:[#allocation7] sm:$0xff]   ;;  %v591_v10 = vld [vmem:[#allocation7 + $0x8] sm:$0xff]  }
  0x6f   :  { %525 = vmatpush3.bf16.msra.mxu0 %v588_v1  ;;  %531 = vmatpush3.bf16.msra.mxu1 %v589_v2  ;;  %v109_v8 = vpack.c.bf16 %v108_v7, %v107_v5  ;;  %v592_v11 = vld [vmem:[#allocation7 + $0x10] sm:$0xff]   ;;  %v593_v12 = vld [vmem:[#allocation7 + $0x18] sm:$0xff]   ;;  %v594_v13 = vld [vmem:[#allocation7 + $0x20] sm:$0xff]  }
  0x70   :  { %536 = vmatprep.subr.bf16.mxu0 %v764_v0  ;;  %556 = vmatprep.subr.bf16.mxu1 %v764_v0  ;;  %v595_v14 = vld [vmem:[#allocation7 + $0x28] sm:$0xff]   ;;  %v596_v15 = vld [vmem:[#allocation7 + $0x30] sm:$0xff]   ;;  %v597_v16 = vld [vmem:[#allocation7 + $0x38] sm:$0xff]  }
  0x71   :  { %v598_v17 = vld [vmem:[#allocation9] sm:$0xff]   ;;  %v599_v18 = vld [vmem:[#allocation9 + $0x8] sm:$0xff]   ;;  %v600_v19 = vld [vmem:[#allocation9 + $0x10] sm:$0xff]  }
  0x72   :  { %527 = vmatmul.mubr.msk.bf16.vlgmr.msra.gmra.mrb[0].mxu0 %vm123_vm1, %v112_v6  ;;  %533 = vmatmul.mubr.msk.bf16.vlgmr.msra.gmra.mrb[0].mxu1 %vm123_vm1, %v109_v8  ;;  %v601_v20 = vld [vmem:[#allocation9 + $0x18] sm:$0xff]   ;;  %v602_v21 = vld [vmem:[#allocation9 + $0x20] sm:$0xff]   ;;  %v603_v22 = vld [vmem:[#allocation9 + $0x28] sm:$0xff]  }
  0x73   :  { %537 = vmatpush3.bf16.msra.mxu0 %v590_v9  ;;  %552 = vmatprep.mubr.msk.bf16.mxu0 %vm765_vm0, %v764_v0  ;;  %v483_v25 = vld [vmem:[#allocation10] ss:$0 sm:$0xff]  ;;  %v604_v39 = vld [vmem:[#allocation9 + $0x30] sm:$0xff]   ;;  %v605_v40 = vld [vmem:[#allocation9 + $0x38] sm:$0xff]  }
  0x74   :  { %538 = vmatprep.subr.bf16.mxu0 %v764_v0  ;;  %572 = vmatprep.mubr.msk.bf16.mxu1 %vm765_vm0, %v764_v0  ;;  %v484_v41 = vld [vmem:[#allocation10 + $0x1] ss:$0 sm:$0xff]  ;;  %v493_v51 = vld [vmem:[#allocation10 + $0x2] ss:$0 sm:$0xff] }
  0x75   :  { %557 = vmatpush3.bf16.msra.mxu1 %v598_v17 }
  0x76   :  { %558 = vmatprep.subr.bf16.mxu1 %v764_v0 }
  0x77   :  { %539 = vmatpush3.bf16.msra.mxu0 %v591_v10 }
  0x78   :  { %540 = vmatprep.subr.bf16.mxu0 %v764_v0 }
  0x79   :  { %559 = vmatpush3.bf16.msra.mxu1 %v599_v18 }
  0x7a   :  { %560 = vmatprep.subr.bf16.mxu1 %v764_v0 }
  0x7b   :  { %541 = vmatpush3.bf16.msra.mxu0 %v592_v11 }
  0x7c   :  { %542 = vmatprep.subr.bf16.mxu0 %v764_v0 }
  0x7d   :  { %561 = vmatpush3.bf16.msra.mxu1 %v600_v19 }
  0x7e   :  { %562 = vmatprep.subr.bf16.mxu1 %v764_v0 }
  0x7f   :  { %543 = vmatpush3.bf16.msra.mxu0 %v593_v12 }
  0x80   :  { %544 = vmatprep.subr.bf16.mxu0 %v764_v0 }
  0x81   :  { %563 = vmatpush3.bf16.msra.mxu1 %v601_v20 }
  0x82   :  { %564 = vmatprep.subr.bf16.mxu1 %v764_v0 }
  0x83   :  { %545 = vmatpush3.bf16.msra.mxu0 %v594_v13 }
  0x84   :  { %546 = vmatprep.subr.bf16.mxu0 %v764_v0 }
  0x85   :  { %565 = vmatpush3.bf16.msra.mxu1 %v602_v21 }
  0x86   :  { %566 = vmatprep.subr.bf16.mxu1 %v764_v0 }
  0x87   :  { %547 = vmatpush3.bf16.msra.mxu0 %v595_v14 }
  0x88   :  { %548 = vmatprep.subr.bf16.mxu0 %v764_v0 }
  0x89   :  { %567 = vmatpush3.bf16.msra.mxu1 %v603_v22 }
  0x8a   :  { %568 = vmatprep.subr.bf16.mxu1 %v764_v0 }
  0x8b   :  { %549 = vmatpush3.bf16.msra.mxu0 %v596_v15 }
  0x8c   :  { %550 = vmatprep.subr.bf16.mxu0 %v764_v0 }
  0x8d   :  { %569 = vmatpush3.bf16.msra.mxu1 %v604_v39 }
  0x8e   :  { %570 = vmatprep.subr.bf16.mxu1 %v764_v0 }
  0x8f   :  { %551 = vmatpush3.bf16.msra.mxu0 %v597_v16 }
  0x91   :  { %571 = vmatpush3.bf16.msra.mxu1 %v605_v40 }
 0x145   :  { %v161_v23 = vpop.f32.mrb[0].mxu0  ;;  %v211_v24 = vpop.f32.mrb[0].mxu1 }
 0x146   :  { %v528_v26 = vpop.f32.mrb[1].mxu0  ;;  %v212_v27 = vadd.f32 %v211_v24, %v161_v23  ;;  %v534_v28 = vpop.f32.mrb[1].mxu1 }
 0x147   :  { %v164_v29 = vpop.f32.mrb[2].mxu0  ;;  %v214_v30 = vpop.f32.mrb[2].mxu1 }
 0x148   :  { %v529_v31 = vpop.f32.mrb[3].mxu0  ;;  %v223_v32 = vadd.f32 %v483_v25, %v212_v27  ;;  %v215_v33 = vadd.f32 %v214_v30, %v164_v29  ;;  %v535_v34 = vpop.f32.mrb[3].mxu1 }
 0x14a   :  { %v224_v35 = vadd.f32 %v483_v25, %v215_v33  ;;  %v225_v36 = vmax.f32 %v223_v32, 0.0 }
 0x14c   :  { %v226_v37 = vmax.f32 %v224_v35, 0.0 }
 0x14e   :  { %v227_v38 = vpack.c.bf16 %v226_v37, %v225_v36 }
 0x150   :  { %553 = vmatmul.mubr.bf16.vlgmr.msra.gmra.mrb[4].mxu0 %v227_v38 }
 0x223   :  { %v331_v42 = vpop.f32.mrb[4].mxu0 }
 0x224   :  { %v332_v43 = vadd.f32 %v484_v41, %v331_v42  ;;  %v554_v44 = vpop.f32.mrb[5].mxu0 }
 0x225   :  { %v334_v45 = vpop.f32.mrb[6].mxu0 }
 0x226   :  { %v335_v46 = vadd.f32 %v484_v41, %v334_v45  ;;  %v555_v47 = vpop.f32.mrb[7].mxu0  ;;  %v338_v48 = vmax.f32 %v332_v43, 0.0 }
 0x228   :  { %v339_v49 = vmax.f32 %v335_v46, 0.0 }
 0x22a   :  { %v340_v50 = vpack.c.bf16 %v339_v49, %v338_v48 }
 0x22c   :  { %573 = vmatmul.mubr.bf16.vlgmr.msra.gmra.mrb[4].mxu1 %v340_v50 }
 0x2ff   :  { %v444_v52 = vpop.f32.mrb[4].mxu1 }
 0x300   :  { %v445_v53 = vadd.f32 %v493_v51, %v444_v52  ;;  %v574_v54 = vpop.f32.mrb[5].mxu1 }
 0x301   :  { %v447_v55 = vpop.f32.mrb[6].mxu1 }
 0x302   :  { %451 = vmax.xlane.f32.xlu0 %v445_v53  ;;  %v575_v56 = vpop.f32.mrb[7].mxu1  ;;  %v448_v57 = vadd.f32 %v493_v51, %v447_v55 }
 0x306   :  { %453 = vmax.xlane.f32.xlu0 %v448_v57 }
 0x38f   :  { %v452_v58 = vpop.xlane.xlu0 %451 }
 0x390   :  { %v455_v59 = vsub.f32 %v445_v53, %v452_v58 }
 0x392   :  { %v457_v60 = vmul.f32 1.442695, %v455_v59 }
 0x393   :  { %v454_v61 = vpop.xlane.xlu0 %453 }
 0x394   :  { %606 = vpow2.f32 %v457_v60  ;;  %v456_v62 = vsub.f32 %v448_v57, %v454_v61 }
 0x396   :  { %v459_v63 = vmul.f32 1.442695, %v456_v62 }
 0x398   :  { %608 = vpow2.f32 %v459_v63 }
 0x39e   :  { %v607_v0 = vpop.eup %606 }
 0x39f   :  { %461 = vadd.xlane.f32.xlu1 %v607_v0 }
 0x3a2   :  { %v609_v1 = vpop.eup %608 }
 0x3a3   :  { %463 = vadd.xlane.f32.xlu1 %v609_v1 }
 0x42c   :  { %v462_v2 = vpop.xlane.xlu1 %461 }
 0x42d   :  { %610 = vrcp.f32 %v462_v2 }
 0x430   :  { %v464_v3 = vpop.xlane.xlu1 %463 }
 0x431   :  { %612 = vrcp.f32 %v464_v3 }
 0x437   :  { %v611_v4 = vpop.eup %610 }
 0x438   :  { %v466_v5 = vmul.f32 %v611_v4, %v607_v0 }
 0x43a   :  { %469 = vst [vmem:[%s935_s7] sm:$0xff] %v466_v5 }
 0x43b   :  { %v613_v6 = vpop.eup %612 }
 0x43c   :  { %v468_v7 = vmul.f32 %v613_v6, %v609_v1 }
 0x43e   :  { %470 = vst [vmem:[%s935_s7 + $0x8] sm:$0xff] %v468_v7 }
 0x43f   :  { %475 = vsyncpa [#allocation3], 1 }
 0x440   :  { %476 = vsyncpa [#allocation5], 1 }
 0x441   :  { %477 = vsyncpa [#allocation8], 1 }
 0x442   :  { %478 = vsyncpa [#allocation11], 1 }

</bundles_post_ra>
